<compile_context>
chip_gen: v7x
topology: tpu7x:2x2x1
jax: 0.10.0
libtpu: 0.0.40
codegen_flags: <defaults>
</compile_context>

<pallas_src>
import functools

import jax
import jax.numpy as jnp
from jax import lax
from jax.experimental import pallas as pl
from jax.experimental.pallas import tpu as pltpu

# config.* constants from the original repo (not provided in the spec).
SHAPE_LR_DECAY = 0.01      # config.shapeLrDecay
SHAPE_BOUND = 0.5          # config.shapeBound
SHAPE_FEATHERS = 3         # config.shapefeathers
IN_FEATURES = 64


def _round_up(n, m):
    return ((n + m - 1) // m) * m


def _shape_pred_kernel(x_ref, w_ref, b_ref, o_ref, *, lr_decay, shape_bound):
    """o = shape_bound * sigmoid(lr_decay * (x @ W^T + b))."""
    x = x_ref[...]                            # (tb, K) native dtype -> MXU
    w = w_ref[...]                            # (F, K)  native dtype (PyTorch layout)
    b = b_ref[...].astype(jnp.float32)        # (1, F)  tiny, cast is free

    # Contract on K (trans_b matmul) -> (tb, F); f32 accumulation on the MXU.
    acc = lax.dot_general(
        x, w,
        dimension_numbers=(((1,), (1,)), ((), ())),
        preferred_element_type=jnp.float32,
    )
    z = (acc + b) * lr_decay
    # sigmoid: exp and reciprocal both ride the EUP slot (no VPU divide).
    y = shape_bound * pl.reciprocal(1.0 + jnp.exp(-z), approx=True)
    o_ref[...] = y.astype(o_ref.dtype)


def shape_pred(x, weight, bias, *,
               shape_lr_decay=SHAPE_LR_DECAY, shape_bound=SHAPE_BOUND):
    """JAX/Pallas equivalent of ShapePred_org.forward.

    Args:
      x:      (B, ...) input; flattened per-batch to (B, 64) like x.view(B,-1).
      weight: (F, 64) Linear weight (PyTorch layout).
      bias:   (F,)    Linear bias.
    Returns:
      squeeze(shape_bound * sigmoid(shape_lr_decay * (x @ W^T + b)))
    """
    B = x.shape[0]
    x2 = x.reshape(B, -1)                # no-op when x is already (B, 64)
    K = x2.shape[1]
    F_out = weight.shape[0]
    assert weight.shape == (F_out, K), (weight.shape, (F_out, K))
    b2 = bias.reshape(1, F_out)

    dt = jnp.result_type(x2.dtype, weight.dtype, bias.dtype)

    # Row-tile selection:
    #  * small B: one block covering everything (block == full array dims, so
    #    the (8,128) divisibility rule is satisfied trivially).
    #  * large B: big tiles (up to 8192 rows) to amortize the ~0.35 us
    #    per-grid-step overhead, but keep >=4 grid steps so v7x's two
    #    TensorCores each get work; rows rounded to a multiple of 8.
    if B <= 1024:
        tb = B
    else:
        tb = min(8192, _round_up(pl.cdiv(B, 4), 8))
        tb = min(tb, B)
    grid = (pl.cdiv(B, tb),)

    itemsize = jnp.dtype(dt).itemsize
    cost = pl.CostEstimate(
        flops=2 * B * K * F_out,
        transcendentals=B * F_out,
        bytes_accessed=(x2.size * x2.dtype.itemsize
                        + weight.size * weight.dtype.itemsize
                        + bias.size * bias.dtype.itemsize
                        + B * F_out * itemsize),
    )

    out = pl.pallas_call(
        functools.partial(
            _shape_pred_kernel,
            lr_decay=float(shape_lr_decay),
            shape_bound=float(shape_bound),
        ),
        out_shape=jax.ShapeDtypeStruct((B, F_out), dt),
        grid=grid,
        in_specs=[
            pl.BlockSpec((tb, K), lambda i: (i, 0)),        # x rows (streamed)
            pl.BlockSpec((F_out, K), lambda i: (0, 0)),     # weight (resident)
            pl.BlockSpec((1, F_out), lambda i: (0, 0)),     # bias   (resident)
        ],
        out_specs=pl.BlockSpec((tb, F_out), lambda i: (i, 0)),
        compiler_params=pltpu.CompilerParams(
            dimension_semantics=("parallel",)),
        cost_estimate=cost,
    )(x2, weight, b2)

    # torch .squeeze(): drop all size-1 dims.
    return jnp.squeeze(out)


def _reference(x, weight, bias, *,
               shape_lr_decay=SHAPE_LR_DECAY, shape_bound=SHAPE_BOUND):
    B = x.shape[0]
    z = shape_lr_decay * (x.reshape(B, -1) @ weight.T + bias)
    return jnp.squeeze(shape_bound * jax.nn.sigmoid(z))


if __name__ == "__main__":
    key = jax.random.PRNGKey(0)
    kx, kw, kx2 = jax.random.split(key, 3)

    # --- production-size case (B=2), matching the module's implied input ---
    B = 2
    x = jax.random.normal(kx, (B, IN_FEATURES), dtype=jnp.float32)

    # Module init: weight ~ N(0, 0.02), bias = -3 / shapeLrDecay.
    weight = 0.02 * jax.random.normal(
        kw, (SHAPE_FEATHERS, IN_FEATURES), dtype=jnp.float32)
    bias = jnp.full((SHAPE_FEATHERS,), -3.0 / SHAPE_LR_DECAY, dtype=jnp.float32)

    out = jax.block_until_ready(shape_pred(x, weight, bias))
    ref = _reference(x, weight, bias)
    assert out.shape == (B, SHAPE_FEATHERS), out.shape
    assert jnp.allclose(out, ref, atol=1e-4, rtol=1e-4), "mismatch vs reference (B=2)"

    # --- exercise the tiled large-B path (grid > 1, padded tail block) ---
    B_big = 2050
    x_big = jax.random.normal(kx2, (B_big, IN_FEATURES), dtype=jnp.float32)
    out_big = jax.block_until_ready(shape_pred(x_big, weight, bias))
    ref_big = _reference(x_big, weight, bias)
    assert out_big.shape == (B_big, SHAPE_FEATHERS), out_big.shape
    assert jnp.allclose(out_big, ref_big, atol=1e-4, rtol=1e-4), \
        "mismatch vs reference (large B)"

    print("KERNEL_OK")
</pallas_src>

<mosaic_0001>
module attributes {stable_mosaic.version = 11 : i64} {
  func.func @_shape_pred_kernel(%arg0: i32, %arg1: memref<2x64xf32, #tpu.memory_space<vmem>>, %arg2: memref<3x64xf32, #tpu.memory_space<vmem>>, %arg3: memref<1x3xf32, #tpu.memory_space<vmem>>, %arg4: memref<2x3xf32, #tpu.memory_space<vmem>>) attributes {dimension_semantics = [#tpu.dimension_semantics<parallel>], iteration_bounds = array<i64: 1>, scalar_prefetch = 0 : i64, scratch_operands = 0 : i64, tpu.core_type = #tpu.core_type<tc>, window_params = [{transform_indices = @transform_0, window_bounds = array<i64: 2, 64>}, {pipeline_mode = #tpu.pipeline_mode<synchronous>, transform_indices = @transform_1, window_bounds = array<i64: 3, 64>}, {pipeline_mode = #tpu.pipeline_mode<synchronous>, transform_indices = @transform_2, window_bounds = array<i64: 1, 3>}, {transform_indices = @transform_3, window_bounds = array<i64: 2, 3>}]} {
    %c0 = arith.constant 0 : index
    %c0_0 = arith.constant 0 : index
    %0 = vector.load %arg1[%c0, %c0_0] : memref<2x64xf32, #tpu.memory_space<vmem>>, vector<2x64xf32>
    %c0_1 = arith.constant 0 : index
    %c0_2 = arith.constant 0 : index
    %1 = vector.load %arg2[%c0_1, %c0_2] : memref<3x64xf32, #tpu.memory_space<vmem>>, vector<3x64xf32>
    %c0_3 = arith.constant 0 : index
    %c0_4 = arith.constant 0 : index
    %2 = vector.load %arg3[%c0_3, %c0_4] : memref<1x3xf32, #tpu.memory_space<vmem>>, vector<1x3xf32>
    %cst = arith.constant dense<0.000000e+00> : vector<2x3xf32>
    %3 = tpu.matmul %0, %1, %cst {dimension_numbers = #tpu.dot_dimension_numbers<[1], [1], [0], [0], [0, 0, 1, 0], [], []>} : vector<2x64xf32>, vector<3x64xf32>, vector<2x3xf32> -> vector<2x3xf32>
    %4 = vector.broadcast %2 : vector<1x3xf32> to vector<2x3xf32>
    %5 = arith.addf %3, %4 : vector<2x3xf32>
    %cst_5 = arith.constant 0.00999999977 : f32
    %6 = vector.broadcast %cst_5 : f32 to vector<2x3xf32>
    %7 = arith.mulf %5, %6 : vector<2x3xf32>
    %cst_6 = arith.constant 0.000000e+00 : f32
    %8 = vector.broadcast %cst_6 : f32 to vector<2x3xf32>
    %9 = arith.subf %8, %7 : vector<2x3xf32>
    %10 = math.exp %9 : vector<2x3xf32>
    %cst_7 = arith.constant 1.000000e+00 : f32
    %11 = vector.broadcast %cst_7 : f32 to vector<2x3xf32>
    %12 = arith.addf %11, %10 : vector<2x3xf32>
    %13 = tpu.reciprocal %12 {approx = true} : vector<2x3xf32> -> vector<2x3xf32>
    %cst_8 = arith.constant 5.000000e-01 : f32
    %14 = vector.broadcast %cst_8 : f32 to vector<2x3xf32>
    %15 = arith.mulf %14, %13 : vector<2x3xf32>
    %c0_9 = arith.constant 0 : index
    %c0_10 = arith.constant 0 : index
    %16 = vector.load %arg4[%c0_9, %c0_10] : memref<2x3xf32, #tpu.memory_space<vmem>>, vector<2x3xf32>
    tpu.vector_store %arg4[%c0_9, %c0_10], %15 {strides = array<i32>} : memref<2x3xf32, #tpu.memory_space<vmem>>, vector<2x3xf32>,
    return
  }
  func.func @transform_0(%arg0: i32) -> (i32, i32) {
    %c0_i32 = arith.constant 0 : i32
    %c0_i32_0 = arith.constant 0 : i32
    return %arg0, %c0_i32 : i32, i32
  }
  func.func @transform_1(%arg0: i32) -> (i32, i32) {
    %c0_i32 = arith.constant 0 : i32
    %c0_i32_0 = arith.constant 0 : i32
    %c0_i32_1 = arith.constant 0 : i32
    return %c0_i32, %c0_i32_0 : i32, i32
  }
  func.func @transform_2(%arg0: i32) -> (i32, i32) {
    %c0_i32 = arith.constant 0 : i32
    %c0_i32_0 = arith.constant 0 : i32
    %c0_i32_1 = arith.constant 0 : i32
    return %c0_i32, %c0_i32_0 : i32, i32
  }
  func.func @transform_3(%arg0: i32) -> (i32, i32) {
    %c0_i32 = arith.constant 0 : i32
    %c0_i32_0 = arith.constant 0 : i32
    return %arg0, %c0_i32 : i32, i32
  }
}

</mosaic_0001>

<bundles_post_ra>
// kernel: tpu_custom_call.1
= control target key start
LH: loop header
LB: loop body
LE: loop exit
PB: predicated region body
PF: predicated region fallthrough
CT: control target
= control target key end

     0   :  { %8 = vsyncpa [#allocation3], 0  ;;  %s305_s0 = inlined_call_operand.hbm [shape: f32[2,64], index: 0, kind: input, shape index: {}]   ;;  %s306_s1 = inlined_call_operand.hbm [shape: f32[3,64], index: 1, kind: input, shape index: {}]   ;;  %s307_s2 = inlined_call_operand.vmem [shape: f32[1,3], index: 2, kind: input, shape index: {}]   ;;  %s308_s3 = inlined_call_operand.hbm [shape: f32[2,3], index: 3, kind: output, shape index: {}]  }
   0x1   :  { %9 = vsyncpa [#allocation6], 0 }
   0x2   :  { %10 = vsyncpa [#allocation4], 0  ;;  %s241_s12 = smov [#allocation2]   ;;  %s242_s14 = smov [#allocation5]  }
   0x3   :  { %s17_s13 = sshll.u32 %s241_s12, 4  ;;  %s27_s15 = sshll.u32 %s242_s14, 4  ;;  %s18_s13 = int_to_ptr.vmem [resolvable:$true] %s17_s13  ;;  %s28_s15 = int_to_ptr.vmem [resolvable:$true] %s27_s15 }
   0x4   :  { %s169_s18 = scalar_lea.hbm %s305_s0, 32 }
   0x5   :  { %p170_p0 = scmp.ne.s32.totalorder %s305_s0, %s169_s18  ;;  %p173_p1 = scmp.lt.u32.totalorder %s169_s18, %s305_s0 }
   0x7   :  { %p175_p2 = pnand %p173_p1, %p170_p0 }
   0x9   :  { %178 = shalt.err (!%p175_p2)
}
   0xa   :  { %s179_s23 = scalar_lea.vmem %s18_s13, 32  ;;  %p184_p4 = scmp.lt.s32.totalorder %s18_s13, %s18_s13 }
   0xb   :  { %p180_p3 = scmp.ne.s32.totalorder %s18_s13, %s179_s23  ;;  %p185_p5 = scmp.lt.s32.totalorder %s179_s23, %s179_s23 }
   0xd   :  { %p186_p6 = por %p185_p5, %p184_p4 }
   0xf   :  { %p187_p7 = pnand %p186_p6, %p180_p3 }
  0x11   :  { %190 = shalt.err (!%p187_p7)
}
  0x12   :  { %20 = dma.hbm_to_vmem [thread:$0]  %s305_s0, 32, %s18_s13, [#allocation3]  }
  0x13   :  { %s191_s28 = scalar_lea.hbm %s306_s1, 64 }
  0x14   :  { %p192_p8 = scmp.ne.s32.totalorder %s306_s1, %s191_s28  ;;  %p195_p9 = scmp.lt.u32.totalorder %s191_s28, %s306_s1 }
  0x16   :  { %p197_p10 = pnand %p195_p9, %p192_p8 }
  0x18   :  { %200 = shalt.err (!%p197_p10)
}
  0x19   :  { %s201_s6 = scalar_lea.vmem %s28_s15, 64  ;;  %p206_p12 = scmp.lt.s32.totalorder %s28_s15, %s28_s15 }
  0x1a   :  { %p202_p11 = scmp.ne.s32.totalorder %s28_s15, %s201_s6  ;;  %p207_p13 = scmp.lt.s32.totalorder %s201_s6, %s201_s6 }
  0x1c   :  { %p208_p0 = por %p207_p13, %p206_p12 }
  0x1e   :  { %p209_p1 = pnand %p208_p0, %p202_p11 }
  0x20   :  { %212 = shalt.err (!%p209_p1)
}
  0x21   :  { %30 = dma.hbm_to_vmem [thread:$0]  %s306_s1, 64, %s28_s15, [#allocation6]  }
  0x22   :  { %235 = dma.done.wait [#allocation3], 32  }
  0x23   :  { %236 = vsyncadd [#allocation3], 4294967264 }
  0x24   :  { %237 = dma.done.wait [#allocation6], 64  }
  0x25   :  { %238 = vsyncadd [#allocation6], 4294967232  ;;  %v243_v0 = vmov 0.0   ;;  %vm244_vm0 = vmmov 0   ;;  %vm48_vm1 = vcmask 523264   ;;  %s245_s1 = smov [#allocation7]  }
  0x26   :  { %155 = vmatprep.subr.mxu0 %v243_v0  ;;  %157 = vmatprep.mubr.msk.f32.mxu0 %vm244_vm0, %v243_v0  ;;  %v40_v1 = vld [vmem:[#allocation5] sm:$0x7]  ;;  %v39_v2 = vld [vmem:[#allocation2] sm:$0x3]  ;;  %s140_s10 = sshll.u32 %s245_s1, 4  ;;  %vm132_vm2 = vcmask 17408   ;;  %s141_s10 = int_to_ptr.vmem [resolvable:$true] %s140_s10 }
  0x27   :  { %156 = vmatpush3.xpose.msk.msra.mxu0 %vm48_vm1, %v40_v1  ;;  %v150_v3 = vld [vmem:[%s307_s2] ss:$0 sm:$0xff]  ;;  %s213_s11 = scalar_lea.vmem %s141_s10, 32  ;;  %p218_p3 = scmp.lt.s32.totalorder %s141_s10, %s141_s10 }
  0x28   :  { %p214_p2 = scmp.ne.s32.totalorder %s141_s10, %s213_s11  ;;  %p219_p4 = scmp.lt.s32.totalorder %s213_s11, %s213_s11 }
  0x2a   :  { %158 = vmatmul.mubr.msk.f32.vlgmr.msra.gmra.mrb[0].mxu0 %vm48_vm1, %v39_v2  ;;  %p220_p5 = por %p219_p4, %p218_p3 }
  0x2c   :  { %p221_p6 = pnand %p220_p5, %p214_p2 }
  0xfd   :  { %v121_v4 = vpop.f32.mrb[0].mxu0 }
  0xfe   :  { %v122_v5 = vadd.f32 %v150_v3, %v121_v4  ;;  %v159_v6 = vpop.f32.mrb[1].mxu0 }
 0x100   :  { %v125_v7 = vmul.f32 0.01, %v122_v5 }
 0x102   :  { %v126_v8 = vsub.f32 0.0, %v125_v7 }
 0x104   :  { %v127_v9 = vmul.f32 1.442695, %v126_v8 }
 0x106   :  { %165 = vpow2.f32 %v127_v9 }
 0x110   :  { %v166_v10 = vpop.eup %165 }
 0x111   :  { %v129_v11 = vadd.f32 1.0, %v166_v10 }
 0x113   :  { %167 = vrcp.f32 %v129_v11 }
 0x11d   :  { %v168_v12 = vpop.eup %167 }
 0x11e   :  { %v131_v13 = vmul.f32 0.5, %v168_v12 }
 0x120   :  { %133 = vst.msk [vmem:[#allocation7] sm:$0x3] %vm132_vm2, %v131_v13 }
 0x121   :  { %224 = shalt.err (!%p221_p6)
}
 0x122   :  { %s225_s13 = scalar_lea.hbm %s308_s3, 32 }
 0x123   :  { %p226_p7 = scmp.ne.s32.totalorder %s308_s3, %s225_s13  ;;  %p229_p8 = scmp.lt.u32.totalorder %s225_s13, %s308_s3 }
 0x125   :  { %p231_p9 = pnand %p229_p8, %p226_p7 }
 0x127   :  { %234 = shalt.err (!%p231_p9)
}
 0x128   :  { %143 = dma.vmem_to_hbm [thread:$0]  %s141_s10, 32, %s308_s3, [#allocation4]  }
 0x129   :  { %239 = dma.done.wait [#allocation4], 32  }
 0x12a   :  { %240 = vsyncadd [#allocation4], 4294967264 }
 0x12b   :  { %147 = vsyncpa [#allocation3], 1 }
 0x12c   :  { %148 = vsyncpa [#allocation6], 1 }
 0x12d   :  { %149 = vsyncpa [#allocation4], 1 }

</bundles_post_ra>
